<compile_context>
chip_gen: v6e
topology: v6e:2x2x1
jax: 0.10.0
libtpu: 0.0.40
codegen_flags: <defaults>
</compile_context>

<pallas_src>
import jax
import jax.numpy as jnp
from jax.experimental import pallas as pl
from jax.experimental.pallas import tpu as pltpu


def _round_up(x, m):
    return ((x + m - 1) // m) * m


def _dqn_kernel(x_ref,
                w1_ref, b1_ref,
                w2_ref, b2_ref,
                w3_ref, b3_ref,
                w4_ref, b4_ref,
                o_ref):
    # Fused 4-layer MLP for one batch tile. Matmul operands are bf16, MXU
    # accumulation is f32; bias-add/ReLU happen in f32.
    x = x_ref[...].astype(jnp.bfloat16)                        # in-kernel cast (f32 -> bf16)

    h = jnp.dot(x, w1_ref[...], preferred_element_type=jnp.float32) + b1_ref[...]
    h = jnp.maximum(h, 0.0).astype(jnp.bfloat16)               # ReLU (dropout = identity)

    h = jnp.dot(h, w2_ref[...], preferred_element_type=jnp.float32) + b2_ref[...]
    h = jnp.maximum(h, 0.0).astype(jnp.bfloat16)               # ReLU (dropout = identity)

    h = jnp.dot(h, w3_ref[...], preferred_element_type=jnp.float32) + b3_ref[...]
    h = jnp.maximum(h, 0.0).astype(jnp.bfloat16)               # ReLU

    out = jnp.dot(h, w4_ref[...], preferred_element_type=jnp.float32) + b4_ref[...]
    # Lane-dense (padded to 128 columns), bf16 store: halves output HBM bytes.
    o_ref[...] = out.astype(jnp.bfloat16)


def prepare_params(params):
    """One-time cast/pad of f32 [in, out] params into kernel-ready form.

    Weights -> bf16; biases stay f32 (added to the f32 accumulator).
    The output head (w4/b4) is zero-padded to a multiple of 128 columns so the
    final store is lane-dense.
    """
    (w1, b1), (w2, b2), (w3, b3), (w4, b4) = (
        params["fc1"], params["fc2"], params["fc3"], params["fc_out"])
    out_dim = w4.shape[1]
    out_pad = _round_up(out_dim, 128)

    w4p = jnp.pad(w4, ((0, 0), (0, out_pad - out_dim)))
    b4p = jnp.pad(b4, ((0, 0), (0, out_pad - out_dim)))

    return {
        "fc1": (w1.astype(jnp.bfloat16), b1.astype(jnp.float32)),
        "fc2": (w2.astype(jnp.bfloat16), b2.astype(jnp.float32)),
        "fc3": (w3.astype(jnp.bfloat16), b3.astype(jnp.float32)),
        "fc_out": (w4p.astype(jnp.bfloat16), b4p.astype(jnp.float32)),
        "out_dim": out_dim,
    }


def _pick_tiling(B):
    """Choose (TB, nb, B_pad) for the batch axis.

    * B <= 256: single full-array tile -> no padding at all (latency path).
    * B  > 256: target ~512-row tiles, force nb >= 2 (keeps both v7x TCs
      busy), TB rounded up to 16 and chosen to minimize B_pad - B.
    """
    if B <= 256:
        return B, 1, B
    nb = max(2, pl.cdiv(B, 512))
    TB = _round_up(pl.cdiv(B, nb), 16)
    return TB, nb, nb * TB


def dqn_forward(x, prepped):
    """x: [B, input_dim] (or [input_dim]). prepped: output of prepare_params."""
    if x.ndim == 1:                                 # mirror x.unsqueeze(0)
        x = x[None, :]
    if x.dtype != jnp.float32:                      # mirror x.float()
        x = x.astype(jnp.float32)

    B, in_dim = x.shape
    (w1, b1), (w2, b2), (w3, b3), (w4, b4) = (
        prepped["fc1"], prepped["fc2"], prepped["fc3"], prepped["fc_out"])
    out_dim = prepped["out_dim"]
    out_pad = w4.shape[1]
    h1, h2, h3 = w1.shape[1], w2.shape[1], w3.shape[1]

    TB, nb, B_pad = _pick_tiling(B)

    x_p = x
    if B_pad != B:                                  # only the tiled, ragged case pays a pad
        x_p = jnp.pad(x_p, ((0, B_pad - B), (0, 0)))

    # Advisory cost hint (matters on the latency-bound small-batch path).
    flops = 2 * B_pad * (in_dim * h1 + h1 * h2 + h2 * h3 + h3 * out_pad)
    bytes_accessed = (x_p.size * 4 + B_pad * out_pad * 2
                      + (w1.size + w2.size + w3.size + w4.size) * 2
                      + (b1.size + b2.size + b3.size + b4.size) * 4)
    cost = pl.CostEstimate(flops=int(flops), transcendentals=0,
                           bytes_accessed=int(bytes_accessed))

    # Weights/biases: constant block index -> resident in VMEM across steps.
    resident = lambda shape: pl.BlockSpec(shape, lambda i: (0, 0))

    out_padded = pl.pallas_call(
        _dqn_kernel,
        out_shape=jax.ShapeDtypeStruct((B_pad, out_pad), jnp.bfloat16),
        grid=(nb,),
        in_specs=[
            pl.BlockSpec((TB, in_dim), lambda i: (i, 0)),   # x tile (f32)
            resident(w1.shape), resident(b1.shape),
            resident(w2.shape), resident(b2.shape),
            resident(w3.shape), resident(b3.shape),
            resident(w4.shape), resident(b4.shape),
        ],
        out_specs=pl.BlockSpec((TB, out_pad), lambda i: (i, 0)),
        compiler_params=pltpu.CompilerParams(
            dimension_semantics=("parallel",)),
        cost_estimate=cost,
    )(x_p, w1, b1, w2, b2, w3, b3, w4, b4)

    return out_padded[:B, :out_dim].astype(jnp.float32)


def init_params(key, input_dim, output_dim):
    """Deterministic synthetic parameters (PyTorch-shaped, stored [in, out], f32)."""
    dims = [(input_dim, 128), (128, 256), (256, 128), (128, output_dim)]
    names = ["fc1", "fc2", "fc3", "fc_out"]
    params = {}
    for name, (fan_in, fan_out) in zip(names, dims):
        key, kw, kb = jax.random.split(key, 3)
        bound = 1.0 / (fan_in ** 0.5)               # same bound as nn.Linear init
        w = jax.random.uniform(kw, (fan_in, fan_out), jnp.float32, -bound, bound)
        b = jax.random.uniform(kb, (1, fan_out), jnp.float32, -bound, bound)
        params[name] = (w, b)
    return params


def reference_forward(x, params):
    """Plain-JAX reference mirroring the kernel's bf16-operand / f32-accum math."""
    if x.ndim == 1:
        x = x[None, :]
    h = x.astype(jnp.bfloat16)
    for name in ["fc1", "fc2", "fc3"]:
        w, b = params[name]
        a = jnp.dot(h, w.astype(jnp.bfloat16),
                    preferred_element_type=jnp.float32) + b
        h = jnp.maximum(a, 0.0).astype(jnp.bfloat16)
    w, b = params["fc_out"]
    out = jnp.dot(h, w.astype(jnp.bfloat16),
                  preferred_element_type=jnp.float32) + b
    return out.astype(jnp.bfloat16).astype(jnp.float32)   # mirror bf16 output store


def f32_reference(x, params):
    """Full-f32 reference (PyTorch math); for loose-tolerance sanity checks."""
    if x.ndim == 1:
        x = x[None, :]
    h = x.astype(jnp.float32)
    for name in ["fc1", "fc2", "fc3"]:
        w, b = params[name]
        h = jnp.maximum(h @ w + b, 0.0)
    w, b = params["fc_out"]
    return h @ w + b


if __name__ == "__main__":
    key = jax.random.PRNGKey(0)
    input_dim, output_dim = 16, 8

    kp, kx1, kx2 = jax.random.split(key, 3)
    params = init_params(kp, input_dim, output_dim)
    prepped = prepare_params(params)

    # --- Small-batch (latency) path: single full-array tile, no padding. ---
    batch = 2
    x = jax.random.normal(kx1, (batch, input_dim), jnp.float32)
    out = jax.block_until_ready(dqn_forward(x, prepped))
    assert out.shape == (batch, output_dim), out.shape
    ref = reference_forward(x, params)
    assert jnp.allclose(out, ref, atol=2e-3, rtol=2e-3), "small-batch mismatch vs reference"
    assert jnp.allclose(out, f32_reference(x, params), atol=5e-2, rtol=5e-2)

    # --- 1-D input (mirrors x.unsqueeze(0)). ---
    xv = jax.random.normal(kx2, (input_dim,), jnp.float32)
    out_v = jax.block_until_ready(dqn_forward(xv, prepped))
    assert out_v.shape == (1, output_dim), out_v.shape
    assert jnp.allclose(out_v, reference_forward(xv, params), atol=2e-3, rtol=2e-3)

    # --- Tiled (throughput) path: ragged batch, >=2 grid steps. ---
    batch_big = 300
    xb = jax.random.normal(kx1, (batch_big, input_dim), jnp.float32)
    out_b = jax.block_until_ready(dqn_forward(xb, prepped))
    assert out_b.shape == (batch_big, output_dim), out_b.shape
    assert jnp.allclose(out_b, reference_forward(xb, params), atol=2e-3, rtol=2e-3), \
        "tiled-batch mismatch vs reference"
    assert jnp.allclose(out_b, f32_reference(xb, params), atol=5e-2, rtol=5e-2)

    print("KERNEL_OK")
</pallas_src>

<mosaic_0001>
module attributes {stable_mosaic.version = 11 : i64} {
  func.func @_dqn_kernel(%arg0: i32, %arg1: memref<2x16xf32, #tpu.memory_space<vmem>>, %arg2: memref<16x128xbf16, #tpu.memory_space<vmem>>, %arg3: memref<1x128xf32, #tpu.memory_space<vmem>>, %arg4: memref<128x256xbf16, #tpu.memory_space<vmem>>, %arg5: memref<1x256xf32, #tpu.memory_space<vmem>>, %arg6: memref<256x128xbf16, #tpu.memory_space<vmem>>, %arg7: memref<1x128xf32, #tpu.memory_space<vmem>>, %arg8: memref<128x128xbf16, #tpu.memory_space<vmem>>, %arg9: memref<1x128xf32, #tpu.memory_space<vmem>>, %arg10: memref<2x128xbf16, #tpu.memory_space<vmem>>) attributes {dimension_semantics = [#tpu.dimension_semantics<parallel>], iteration_bounds = array<i64: 1>, scalar_prefetch = 0 : i64, scratch_operands = 0 : i64, tpu.core_type = #tpu.core_type<tc>, window_params = [{transform_indices = @transform_0, window_bounds = array<i64: 2, 16>}, {pipeline_mode = #tpu.pipeline_mode<synchronous>, transform_indices = @transform_1, window_bounds = array<i64: 16, 128>}, {pipeline_mode = #tpu.pipeline_mode<synchronous>, transform_indices = @transform_2, window_bounds = array<i64: 1, 128>}, {pipeline_mode = #tpu.pipeline_mode<synchronous>, transform_indices = @transform_3, window_bounds = array<i64: 128, 256>}, {pipeline_mode = #tpu.pipeline_mode<synchronous>, transform_indices = @transform_4, window_bounds = array<i64: 1, 256>}, {pipeline_mode = #tpu.pipeline_mode<synchronous>, transform_indices = @transform_5, window_bounds = array<i64: 256, 128>}, {pipeline_mode = #tpu.pipeline_mode<synchronous>, transform_indices = @transform_6, window_bounds = array<i64: 1, 128>}, {pipeline_mode = #tpu.pipeline_mode<synchronous>, transform_indices = @transform_7, window_bounds = array<i64: 128, 128>}, {pipeline_mode = #tpu.pipeline_mode<synchronous>, transform_indices = @transform_8, window_bounds = array<i64: 1, 128>}, {transform_indices = @transform_9, window_bounds = array<i64: 2, 128>}]} {
    %c0 = arith.constant 0 : index
    %c0_0 = arith.constant 0 : index
    %0 = vector.load %arg1[%c0, %c0_0] : memref<2x16xf32, #tpu.memory_space<vmem>>, vector<2x16xf32>
    %1 = arith.truncf %0 : vector<2x16xf32> to vector<2x16xbf16>
    %c0_1 = arith.constant 0 : index
    %c0_2 = arith.constant 0 : index
    %2 = vector.load %arg2[%c0_1, %c0_2] : memref<16x128xbf16, #tpu.memory_space<vmem>>, vector<16x128xbf16>
    %cst = arith.constant dense<0.000000e+00> : vector<2x128xf32>
    %3 = tpu.matmul %1, %2, %cst {dimension_numbers = #tpu.dot_dimension_numbers<[1], [0], [0], [1], [0, 0, 1, 1], [], []>} : vector<2x16xbf16>, vector<16x128xbf16>, vector<2x128xf32> -> vector<2x128xf32>
    %c0_3 = arith.constant 0 : index
    %c0_4 = arith.constant 0 : index
    %4 = vector.load %arg3[%c0_3, %c0_4] : memref<1x128xf32, #tpu.memory_space<vmem>>, vector<1x128xf32>
    %5 = vector.broadcast %4 : vector<1x128xf32> to vector<2x128xf32>
    %6 = arith.addf %3, %5 : vector<2x128xf32>
    %cst_5 = arith.constant 0.000000e+00 : f32
    %7 = vector.broadcast %cst_5 : f32 to vector<2x128xf32>
    %8 = arith.maximumf %6, %7 : vector<2x128xf32>
    %9 = arith.truncf %8 : vector<2x128xf32> to vector<2x128xbf16>
    %c0_6 = arith.constant 0 : index
    %c0_7 = arith.constant 0 : index
    %10 = vector.load %arg4[%c0_6, %c0_7] : memref<128x256xbf16, #tpu.memory_space<vmem>>, vector<128x256xbf16>
    %cst_8 = arith.constant dense<0.000000e+00> : vector<2x256xf32>
    %11 = tpu.matmul %9, %10, %cst_8 {dimension_numbers = #tpu.dot_dimension_numbers<[1], [0], [0], [1], [0, 0, 1, 1], [], []>} : vector<2x128xbf16>, vector<128x256xbf16>, vector<2x256xf32> -> vector<2x256xf32>
    %c0_9 = arith.constant 0 : index
    %c0_10 = arith.constant 0 : index
    %12 = vector.load %arg5[%c0_9, %c0_10] : memref<1x256xf32, #tpu.memory_space<vmem>>, vector<1x256xf32>
    %13 = vector.broadcast %12 : vector<1x256xf32> to vector<2x256xf32>
    %14 = arith.addf %11, %13 : vector<2x256xf32>
    %cst_11 = arith.constant 0.000000e+00 : f32
    %15 = vector.broadcast %cst_11 : f32 to vector<2x256xf32>
    %16 = arith.maximumf %14, %15 : vector<2x256xf32>
    %17 = arith.truncf %16 : vector<2x256xf32> to vector<2x256xbf16>
    %c0_12 = arith.constant 0 : index
    %c0_13 = arith.constant 0 : index
    %18 = vector.load %arg6[%c0_12, %c0_13] : memref<256x128xbf16, #tpu.memory_space<vmem>>, vector<256x128xbf16>
    %cst_14 = arith.constant dense<0.000000e+00> : vector<2x128xf32>
    %19 = tpu.matmul %17, %18, %cst_14 {dimension_numbers = #tpu.dot_dimension_numbers<[1], [0], [0], [1], [0, 0, 1, 1], [], []>} : vector<2x256xbf16>, vector<256x128xbf16>, vector<2x128xf32> -> vector<2x128xf32>
    %c0_15 = arith.constant 0 : index
    %c0_16 = arith.constant 0 : index
    %20 = vector.load %arg7[%c0_15, %c0_16] : memref<1x128xf32, #tpu.memory_space<vmem>>, vector<1x128xf32>
    %21 = vector.broadcast %20 : vector<1x128xf32> to vector<2x128xf32>
    %22 = arith.addf %19, %21 : vector<2x128xf32>
    %cst_17 = arith.constant 0.000000e+00 : f32
    %23 = vector.broadcast %cst_17 : f32 to vector<2x128xf32>
    %24 = arith.maximumf %22, %23 : vector<2x128xf32>
    %25 = arith.truncf %24 : vector<2x128xf32> to vector<2x128xbf16>
    %c0_18 = arith.constant 0 : index
    %c0_19 = arith.constant 0 : index
    %26 = vector.load %arg8[%c0_18, %c0_19] : memref<128x128xbf16, #tpu.memory_space<vmem>>, vector<128x128xbf16>
    %cst_20 = arith.constant dense<0.000000e+00> : vector<2x128xf32>
    %27 = tpu.matmul %25, %26, %cst_20 {dimension_numbers = #tpu.dot_dimension_numbers<[1], [0], [0], [1], [0, 0, 1, 1], [], []>} : vector<2x128xbf16>, vector<128x128xbf16>, vector<2x128xf32> -> vector<2x128xf32>
    %c0_21 = arith.constant 0 : index
    %c0_22 = arith.constant 0 : index
    %28 = vector.load %arg9[%c0_21, %c0_22] : memref<1x128xf32, #tpu.memory_space<vmem>>, vector<1x128xf32>
    %29 = vector.broadcast %28 : vector<1x128xf32> to vector<2x128xf32>
    %30 = arith.addf %27, %29 : vector<2x128xf32>
    %31 = arith.truncf %30 : vector<2x128xf32> to vector<2x128xbf16>
    %c0_23 = arith.constant 0 : index
    %c0_24 = arith.constant 0 : index
    %32 = vector.load %arg10[%c0_23, %c0_24] : memref<2x128xbf16, #tpu.memory_space<vmem>>, vector<2x128xbf16>
    tpu.vector_store %arg10[%c0_23, %c0_24], %31 {strides = array<i32>} : memref<2x128xbf16, #tpu.memory_space<vmem>>, vector<2x128xbf16>,
    return
  }
  func.func @transform_0(%arg0: i32) -> (i32, i32) {
    %c0_i32 = arith.constant 0 : i32
    %c0_i32_0 = arith.constant 0 : i32
    return %arg0, %c0_i32 : i32, i32
  }
  func.func @transform_1(%arg0: i32) -> (i32, i32) {
    %c0_i32 = arith.constant 0 : i32
    %c0_i32_0 = arith.constant 0 : i32
    %c0_i32_1 = arith.constant 0 : i32
    return %c0_i32, %c0_i32_0 : i32, i32
  }
  func.func @transform_2(%arg0: i32) -> (i32, i32) {
    %c0_i32 = arith.constant 0 : i32
    %c0_i32_0 = arith.constant 0 : i32
    %c0_i32_1 = arith.constant 0 : i32
    return %c0_i32, %c0_i32_0 : i32, i32
  }
  func.func @transform_3(%arg0: i32) -> (i32, i32) {
    %c0_i32 = arith.constant 0 : i32
    %c0_i32_0 = arith.constant 0 : i32
    %c0_i32_1 = arith.constant 0 : i32
    return %c0_i32, %c0_i32_0 : i32, i32
  }
  func.func @transform_4(%arg0: i32) -> (i32, i32) {
    %c0_i32 = arith.constant 0 : i32
    %c0_i32_0 = arith.constant 0 : i32
    %c0_i32_1 = arith.constant 0 : i32
    return %c0_i32, %c0_i32_0 : i32, i32
  }
  func.func @transform_5(%arg0: i32) -> (i32, i32) {
    %c0_i32 = arith.constant 0 : i32
    %c0_i32_0 = arith.constant 0 : i32
    %c0_i32_1 = arith.constant 0 : i32
    return %c0_i32, %c0_i32_0 : i32, i32
  }
  func.func @transform_6(%arg0: i32) -> (i32, i32) {
    %c0_i32 = arith.constant 0 : i32
    %c0_i32_0 = arith.constant 0 : i32
    %c0_i32_1 = arith.constant 0 : i32
    return %c0_i32, %c0_i32_0 : i32, i32
  }
  func.func @transform_7(%arg0: i32) -> (i32, i32) {
    %c0_i32 = arith.constant 0 : i32
    %c0_i32_0 = arith.constant 0 : i32
    %c0_i32_1 = arith.constant 0 : i32
    return %c0_i32, %c0_i32_0 : i32, i32
  }
  func.func @transform_8(%arg0: i32) -> (i32, i32) {
    %c0_i32 = arith.constant 0 : i32
    %c0_i32_0 = arith.constant 0 : i32
    %c0_i32_1 = arith.constant 0 : i32
    return %c0_i32, %c0_i32_0 : i32, i32
  }
  func.func @transform_9(%arg0: i32) -> (i32, i32) {
    %c0_i32 = arith.constant 0 : i32
    %c0_i32_0 = arith.constant 0 : i32
    return %arg0, %c0_i32 : i32, i32
  }
}

</mosaic_0001>

<bundles_post_ra>
// kernel: tpu_custom_call.1
= control target key start
LH: loop header
LB: loop body
LE: loop exit
PB: predicated region body
PF: predicated region fallthrough
CT: control target
= control target key end

     0   :  { %14 = vsyncpa [#allocation3], 0  ;;  %s1032_s0 = inlined_call_operand.hbm [shape: f32[2,16], index: 0, kind: input, shape index: {}]   ;;  %s1033_s1 = inlined_call_operand.hbm [shape: bf16[16,128], index: 1, kind: input, shape index: {}]   ;;  %s1034_s2 = inlined_call_operand.vmem [shape: f32[1,128], index: 2, kind: input, shape index: {}]   ;;  %s1035_s3 = inlined_call_operand.hbm [shape: bf16[128,256], index: 3, kind: input, shape index: {}]   ;;  %s1036_s4 = inlined_call_operand.vmem [shape: f32[1,256], index: 4, kind: input, shape index: {}]   ;;  %s1037_s5 = inlined_call_operand.hbm [shape: bf16[256,128], index: 5, kind: input, shape index: {}]   ;;  %s1038_s6 = inlined_call_operand.vmem [shape: f32[1,128], index: 6, kind: input, shape index: {}]   ;;  %s1039_s7 = inlined_call_operand.hbm [shape: bf16[128,128], index: 7, kind: input, shape index: {}]   ;;  %s1040_s8 = inlined_call_operand.vmem [shape: f32[1,128], index: 8, kind: input, shape index: {}]   ;;  %s1041_s9 = inlined_call_operand.hbm [shape: bf16[2,128], index: 9, kind: output, shape index: {}]  }
   0x1   :  { %15 = vsyncpa [#allocation6], 0 }
   0x2   :  { %16 = vsyncpa [#allocation9], 0 }
   0x3   :  { %17 = vsyncpa [#allocation4], 0  ;;  %s917_s30 = smov [#allocation5]  }
   0x4   :  { %s33_s10 = sshll.u32 %s917_s30, 4  ;;  %s34_s10 = int_to_ptr.vmem [resolvable:$true] %s33_s10 }
   0x5   :  { %s797_s11 = scalar_lea.vmem %s34_s10, 128  ;;  %p802_p1 = scmp.lt.s32.totalorder %s34_s10, %s34_s10 }
   0x6   :  { %p798_p0 = scmp.ne.s32.totalorder %s34_s10, %s797_s11  ;;  %p803_p2 = scmp.lt.s32.totalorder %s797_s11, %s797_s11 }
   0x8   :  { %p804_p3 = por %p803_p2, %p802_p1 }
   0xa   :  { %p805_p4 = pnand %p804_p3, %p798_p0 }
   0xc   :  { %808 = shalt.err (!%p805_p4)
}
   0xd   :  { %s918_s12 = smov 64   ;;  %s919_s13 = smov 4  }
   0xe   :  { %39 = dma.hbm_to_vmem [thread:$0]  %s1033_s1, 128, %s34_s10, [#allocation6], %s918_s12, %s918_s12, %s919_s13  }
   0xf   :  { %s920_s16 = smov [#allocation8]   ;;  %s921_s18 = smov [#allocation2]  }
  0x10   :  { %s61_s17 = sshll.u32 %s920_s16, 4  ;;  %s24_s19 = sshll.u32 %s921_s18, 4  ;;  %s62_s17 = int_to_ptr.vmem [resolvable:$true] %s61_s17  ;;  %s25_s19 = int_to_ptr.vmem [resolvable:$true] %s24_s19 }
  0x11   :  { %s817_s20 = scalar_lea.vmem %s62_s17, 2048  ;;  %p822_p6 = scmp.lt.s32.totalorder %s62_s17, %s62_s17 }
  0x12   :  { %p818_p5 = scmp.ne.s32.totalorder %s62_s17, %s817_s20  ;;  %p823_p7 = scmp.lt.s32.totalorder %s817_s20, %s817_s20 }
  0x14   :  { %p824_p8 = por %p823_p7, %p822_p6 }
  0x16   :  { %p825_p9 = pnand %p824_p8, %p818_p5 }
  0x18   :  { %828 = shalt.err (!%p825_p9)
}
  0x19   :  { %67 = dma.hbm_to_vmem [thread:$0]  %s1037_s5, 2048, %s62_s17, [#allocation9], %s918_s12, %s918_s12, %s919_s13  }
  0x1a   :  { %s837_s1 = scalar_lea.vmem %s25_s19, 32  ;;  %p842_p11 = scmp.lt.s32.totalorder %s25_s19, %s25_s19 }
  0x1b   :  { %p838_p10 = scmp.ne.s32.totalorder %s25_s19, %s837_s1  ;;  %p843_p12 = scmp.lt.s32.totalorder %s837_s1, %s837_s1 }
  0x1d   :  { %p844_p13 = por %p843_p12, %p842_p11 }
  0x1f   :  { %p845_p0 = pnand %p844_p13, %p838_p10 }
  0x21   :  { %848 = shalt.err (!%p845_p0)
}
  0x22   :  { %27 = dma.hbm_to_vmem [thread:$0]  %s1032_s0, 32, %s25_s19, [#allocation3]  }
  0x23   :  { %s922_s25 = smov [#allocation7]  }
  0x24   :  { %s47_s26 = sshll.u32 %s922_s25, 4  ;;  %s48_s26 = int_to_ptr.vmem [resolvable:$true] %s47_s26 }
  0x25   :  { %s857_s27 = scalar_lea.vmem %s48_s26, 2048  ;;  %p862_p2 = scmp.lt.s32.totalorder %s48_s26, %s48_s26 }
  0x26   :  { %p858_p1 = scmp.ne.s32.totalorder %s48_s26, %s857_s27  ;;  %p863_p3 = scmp.lt.s32.totalorder %s857_s27, %s857_s27 }
  0x28   :  { %p864_p4 = por %p863_p3, %p862_p2 }
  0x2a   :  { %p865_p5 = pnand %p864_p4, %p858_p1 }
  0x2c   :  { %868 = shalt.err (!%p865_p5)
}
  0x2d   :  { %s923_s5 = smov 128   ;;  %s924_s28 = smov 8  }
  0x2e   :  { %53 = dma.hbm_to_vmem [thread:$0]  %s1035_s3, 2048, %s48_s26, [#allocation6], %s923_s5, %s923_s5, %s924_s28  }
  0x2f   :  { %s925_s10 = smov [#allocation10]  }
  0x30   :  { %s75_s11 = sshll.u32 %s925_s10, 4  ;;  %s76_s11 = int_to_ptr.vmem [resolvable:$true] %s75_s11 }
  0x31   :  { %s877_s0 = scalar_lea.vmem %s76_s11, 1024  ;;  %p882_p7 = scmp.lt.s32.totalorder %s76_s11, %s76_s11 }
  0x32   :  { %p878_p6 = scmp.ne.s32.totalorder %s76_s11, %s877_s0  ;;  %p883_p8 = scmp.lt.s32.totalorder %s877_s0, %s877_s0 }
  0x34   :  { %p884_p9 = por %p883_p8, %p882_p7 }
  0x36   :  { %p885_p10 = pnand %p884_p9, %p878_p6 }
  0x38   :  { %888 = shalt.err (!%p885_p10)
}
  0x39   :  { %81 = dma.hbm_to_vmem [thread:$0]  %s1039_s7, 1024, %s76_s11, [#allocation9], %s918_s12, %s918_s12, %s919_s13  }
  0x3a   :  { %909 = dma.done.wait [#allocation3], 32  }
  0x3b   :  { %910 = vsyncadd [#allocation3], 4294967264 }
  0x3c   :  { %911 = dma.done.wait [#allocation6], 2176  }
  0x3d   :  { %912 = vsyncadd [#allocation6], 4294965120 }
  0x3e   :  { %913 = dma.done.wait [#allocation9], 3072  }
  0x3f   :  { %914 = vsyncadd [#allocation9], 4294964224  ;;  %v926_v0 = vmov 0.0   ;;  %vm927_vm0 = vmmov 0   ;;  %v740_v1 = vld [vmem:[#allocation5] sm:$0xff]   ;;  %vm117_vm1 = vcmask 130048   ;;  %v181_v50 = vlaneseq }
  0x40   :  { %701 = vmatprep.subr.bf16.mxu0 %v926_v0  ;;  %703 = vmatprep.mubr.msk.bf16.mxu0 %vm927_vm0, %v926_v0  ;;  %v100_v2 = vld [vmem:[#allocation2] sm:$0x3]  ;;  %v743_v5 = vld [vmem:[#allocation7 + $0x70] ss:$8 sps:$4 sm:$0xff]   ;;  %v744_v6 = vld [vmem:[#allocation7 + $0x64] ss:$8 sps:$4 sm:$0xff]  }
  0x41   :  { %702 = vmatpush3.bf16.msra.mxu0 %v740_v1  ;;  %v101_v3 = vpack.c.bf16 %v100_v2, %v100_v2  ;;  %v741_v4 = vld [vmem:[#allocation7 + $0x74] ss:$8 sps:$4 sm:$0xff]   ;;  %v746_v7 = vld [vmem:[#allocation7 + $0x60] ss:$8 sps:$4 sm:$0xff]   ;;  %v749_v9 = vld [vmem:[#allocation7 + $0x50] ss:$8 sps:$4 sm:$0xff]  }
  0x42   :  { %271 = vmatprep.subr.bf16.mxu1 %v741_v4  ;;  %v747_v8 = vld [vmem:[#allocation7 + $0x54] ss:$8 sps:$4 sm:$0xff]   ;;  %v750_v10 = vld [vmem:[#allocation7 + $0x44] ss:$8 sps:$4 sm:$0xff]   ;;  %v752_v11 = vld [vmem:[#allocation7 + $0x40] ss:$8 sps:$4 sm:$0xff]  }
  0x43   :  { %272 = vmatpush1.bf16.msra.mxu1 %v743_v5  ;;  %v753_v12 = vld [vmem:[#allocation7 + $0x34] ss:$8 sps:$4 sm:$0xff]   ;;  %v755_v13 = vld [vmem:[#allocation7 + $0x30] ss:$8 sps:$4 sm:$0xff]   ;;  %v756_v14 = vld [vmem:[#allocation7 + $0x24] ss:$8 sps:$4 sm:$0xff]  }
  0x44   :  { %704 = vmatmul.mubr.msk.bf16.vlgmr.msra.gmra.mxu0 %vm117_vm1, %v101_v3  ;;  %273 = vmatprep.subr.bf16.mxu1 %v744_v6  ;;  %v758_v15 = vld [vmem:[#allocation7 + $0x20] ss:$8 sps:$4 sm:$0xff]   ;;  %v759_v16 = vld [vmem:[#allocation7 + $0x14] ss:$8 sps:$4 sm:$0xff]   ;;  %v761_v17 = vld [vmem:[#allocation7 + $0x10] ss:$8 sps:$4 sm:$0xff]  }
  0x45   :  { %v762_v18 = vld [vmem:[#allocation7 + $0x4] ss:$8 sps:$4 sm:$0xff]   ;;  %v764_v19 = vld [vmem:[#allocation7] ss:$8 sps:$4 sm:$0xff]   ;;  %v928_v20 = vmov 0   ;;  %v765_v21 = vld [vmem:[#allocation8 + $0x78] sm:$0xff]  }
  0x46   :  { %303 = vmatprep.mubr.bf16.mxu1 %v928_v20  ;;  %v766_v22 = vld [vmem:[#allocation8 + $0x38] sm:$0xff]   ;;  %v767_v23 = vld [vmem:[#allocation8 + $0x70] sm:$0xff]   ;;  %670 = vmatprep.subr.bf16.mxu0 %v765_v21  ;;  %v769_v25 = vld [vmem:[#allocation8 + $0x68] sm:$0xff]   ;;  %v182_v51 = vshrl.u32 %v181_v50, 7  ;;  %s929_s18 = smov [#allocation11]  }
  0x47   :  { %274 = vmatpush1.bf16.msra.mxu1 %v746_v7  ;;  %671 = vmatpush3.bf16.msra.mxu0 %v766_v22  ;;  %v768_v24 = vld [vmem:[#allocation8 + $0x30] sm:$0xff]   ;;  %v770_v26 = vld [vmem:[#allocation8 + $0x28] sm:$0xff]   ;;  %v771_v27 = vld [vmem:[#allocation8 + $0x60] sm:$0xff]   ;;  %s612_s19 = sshll.u32 %s929_s18, 4  ;;  %s613_s19 = int_to_ptr.vmem [resolvable:$true] %s612_s19 }
  0x48   :  { %275 = vmatprep.subr.bf16.mxu1 %v747_v8  ;;  %672 = vmatprep.subr.bf16.mxu0 %v767_v23  ;;  %v772_v28 = vld [vmem:[#allocation8 + $0x20] sm:$0xff]   ;;  %v773_v29 = vld [vmem:[#allocation8 + $0x58] sm:$0xff]   ;;  %v775_v31 = vld [vmem:[#allocation8 + $0x50] sm:$0xff]   ;;  %v183_v52 = vsub.s32 0, %v182_v51  ;;  %v187_v54 = vsub.s32 1, %v182_v51  ;;  %s893_s20 = scalar_lea.vmem %s613_s19, 32  ;;  %p894_p12 = scmp.lt.s32.totalorder %s613_s19, %s613_s19 }
  0x49   :  { %v774_v30 = vld [vmem:[#allocation8 + $0x18] sm:$0xff]   ;;  %v776_v32 = vld [vmem:[#allocation8 + $0x10] sm:$0xff]   ;;  %v777_v41 = vld [vmem:[#allocation8 + $0x48] sm:$0xff]  }
  0x4a   :  { %v623_v33 = vld [vmem:[%s1034_s2] ss:$0 sm:$0xff]  ;;  %v778_v42 = vld [vmem:[#allocation8 + $0x8] sm:$0xff]   ;;  %v779_v43 = vld [vmem:[#allocation8 + $0x40] sm:$0xff]  }
  0x4b   :  { %276 = vmatpush1.bf16.msra.mxu1 %v749_v9  ;;  %673 = vmatpush3.bf16.msra.mxu0 %v768_v24  ;;  %v780_v44 = vld [vmem:[#allocation8] sm:$0xff]   ;;  %v781_v45 = vld [vmem:[#allocation10 + $0x38] sm:$0xff]   ;;  %v782_v46 = vld [vmem:[#allocation10 + $0x30] sm:$0xff]  }
  0x4c   :  { %277 = vmatprep.subr.bf16.mxu1 %v750_v10  ;;  %674 = vmatprep.subr.bf16.mxu0 %v769_v25  ;;  %v783_v47 = vld [vmem:[#allocation10 + $0x28] sm:$0xff]   ;;  %v784_v48 = vld [vmem:[#allocation10 + $0x20] sm:$0xff]   ;;  %v785_v49 = vld [vmem:[#allocation10 + $0x18] sm:$0xff]  }
  0x4d   :  { %v179_v53 = vld [vmem:[%s1036_s4] sm:$0x3]  ;;  %v787_v5 = vld [vmem:[#allocation10 + $0x8] sm:$0xff]   ;;  %v788_v6 = vld [vmem:[#allocation10] sm:$0xff]  }
  0x4e   :  { %v184_v55 = vrot.slane %v179_v53, %v183_v52  ;;  %v188_v56 = vrot.slane %v179_v53, %v187_v54  ;;  %v786_v4 = vld [vmem:[#allocation10 + $0x10] sm:$0xff]  }
  0x4f   :  { %278 = vmatpush1.bf16.msra.mxu1 %v752_v11  ;;  %675 = vmatpush3.bf16.msra.mxu0 %v770_v26  ;;  %v642_v8 = vld [vmem:[%s1038_s6] ss:$0 sm:$0xff]  ;;  %s889_s6 = scalar_lea.vmem %s613_s19, 16 }
  0x50   :  { %279 = vmatprep.subr.bf16.mxu1 %v753_v12  ;;  %676 = vmatprep.subr.bf16.mxu0 %v771_v27  ;;  %p890_p11 = scmp.ne.s32.totalorder %s613_s19, %s889_s6  ;;  %p895_p13 = scmp.lt.s32.totalorder %s893_s20, %s889_s6 }
  0x52   :  { %p896_p0 = por %p895_p13, %p894_p12 }
  0x53   :  { %280 = vmatpush1.bf16.msra.mxu1 %v755_v13  ;;  %677 = vmatpush3.bf16.msra.mxu0 %v772_v28 }
  0x54   :  { %281 = vmatprep.subr.bf16.mxu1 %v756_v14  ;;  %678 = vmatprep.subr.bf16.mxu0 %v773_v29  ;;  %p897_p1 = pnand %p896_p0, %p890_p11 }
  0x57   :  { %282 = vmatpush1.bf16.msra.mxu1 %v758_v15  ;;  %679 = vmatpush3.bf16.msra.mxu0 %v774_v30 }
  0x58   :  { %283 = vmatprep.subr.bf16.mxu1 %v759_v16  ;;  %680 = vmatprep.subr.bf16.mxu0 %v775_v31  ;;  %v659_v16 = vld [vmem:[%s1040_s8] ss:$0 sm:$0xff] }
  0x5b   :  { %284 = vmatpush1.bf16.msra.mxu1 %v761_v17  ;;  %681 = vmatpush3.bf16.msra.mxu0 %v776_v32 }
  0x5c   :  { %285 = vmatprep.subr.bf16.mxu1 %v762_v18  ;;  %682 = vmatprep.subr.bf16.mxu0 %v777_v41 }
  0x5f   :  { %286 = vmatpush1.bf16.msra.mxu1 %v764_v19  ;;  %683 = vmatpush3.bf16.msra.mxu0 %v778_v42 }
  0x60   :  { %707 = vmatprep.subr.bf16.mxu1 %v926_v0  ;;  %684 = vmatprep.subr.bf16.mxu0 %v779_v43 }
  0x63   :  { %685 = vmatpush3.bf16.msra.mxu0 %v780_v44 }
 0x104   :  { %v155_v34 = vpop.f32.mrf.mxu0 }
 0x105   :  { %v156_v35 = vadd.f32 %v623_v33, %v155_v34 }
 0x106   :  { %v705_v36 = vpop.f32.mrf.mxu0 }
 0x107   :  { %v161_v37 = vmax.f32 %v156_v35, 0.0 }
 0x108   :  { %v158_v38 = vpop.f32.mrf.mxu0 }
 0x109   :  { %v162_v39 = vpack.c.bf16 %v161_v37, %v161_v37 }
 0x10a   :  { %v706_v40 = vpop.f32.mrf.mxu0 }
 0x10b   :  { %304 = vmatmul.mubr.bf16.vlgmr.msra.gmra.mxu1 %v162_v39 }
 0x10c   :  { %723 = vmatprep.mubr.msk.bf16.mxu1 %vm927_vm0, %v926_v0  ;;  %708 = vmatpush3.bf16.msra.mxu1 %v781_v45 }
 0x10d   :  { %709 = vmatprep.subr.bf16.mxu1 %v926_v0 }
 0x110   :  { %710 = vmatpush3.bf16.msra.mxu1 %v782_v46 }
 0x111   :  { %711 = vmatprep.subr.bf16.mxu1 %v926_v0 }
 0x114   :  { %712 = vmatpush3.bf16.msra.mxu1 %v783_v47 }
 0x115   :  { %713 = vmatprep.subr.bf16.mxu1 %v926_v0 }
 0x118   :  { %714 = vmatpush3.bf16.msra.mxu1 %v784_v48 }
 0x119   :  { %715 = vmatprep.subr.bf16.mxu1 %v926_v0 }
 0x11c   :  { %716 = vmatpush3.bf16.msra.mxu1 %v785_v49 }
 0x11d   :  { %717 = vmatprep.subr.bf16.mxu1 %v926_v0 }
 0x120   :  { %718 = vmatpush3.bf16.msra.mxu1 %v786_v4 }
 0x121   :  { %719 = vmatprep.subr.bf16.mxu1 %v926_v0 }
 0x124   :  { %720 = vmatpush3.bf16.msra.mxu1 %v787_v5 }
 0x125   :  { %721 = vmatprep.subr.bf16.mxu1 %v926_v0 }
 0x128   :  { %722 = vmatpush3.bf16.msra.mxu1 %v788_v6 }
 0x1cb   :  { %v305_v57 = vpop.f32.mrf.mxu1 }
 0x1cc   :  { %v306_v58 = vadd.f32 %v305_v57, %v184_v55 }
 0x1cd   :  { %v307_v59 = vpop.f32.mrf.mxu1 }
 0x1ce   :  { %v308_v60 = vadd.f32 %v307_v59, %v188_v56  ;;  %v312_v61 = vmax.f32 %v306_v58, 0.0 }
 0x1cf   :  { %v309_v62 = vpop.f32.mrf.mxu1 }
 0x1d0   :  { %v313_v63 = vmax.f32 %v308_v60, 0.0  ;;  %v314_v3 = vpack.c.bf16 %v312_v61, %v312_v61 }
 0x1d1   :  { %v310_v1 = vpop.f32.mrf.mxu1 }
 0x1d2   :  { %v315_v2 = vpack.c.bf16 %v313_v63, %v313_v63 }
 0x1d4   :  { %483 = vmatprep.mubr.bf16.mxu0 %v315_v2 }
 0x1d5   :  { %484 = vmatmul.mubr.bf16.vlgmr.msra.gmra.mxu0 %v314_v3 }
 0x295   :  { %v686_v7 = vpop.f32.mrf.mxu0 }
 0x297   :  { %v687_v9 = vpop.f32.mrf.mxu0 }
 0x298   :  { %v688_v10 = vadd.f32 %v687_v9, %v686_v7 }
 0x299   :  { %v689_v11 = vpop.f32.mrf.mxu0 }
 0x29a   :  { %v486_v12 = vadd.f32 %v688_v10, %v642_v8 }
 0x29b   :  { %v690_v13 = vpop.f32.mrf.mxu0 }
 0x29c   :  { %v491_v14 = vmax.f32 %v486_v12, 0.0 }
 0x29e   :  { %v492_v15 = vpack.c.bf16 %v491_v14, %v491_v14 }
 0x2a0   :  { %724 = vmatmul.mubr.bf16.vlgmr.msra.gmra.mxu1 %v492_v15 }
 0x360   :  { %v598_v0 = vpop.f32.mrf.mxu1 }
 0x361   :  { %v599_v17 = vadd.f32 %v659_v16, %v598_v0 }
 0x362   :  { %v725_v18 = vpop.f32.mrf.mxu1 }
 0x363   :  { %v604_v19 = vpack.c.bf16 %v599_v17, %v599_v17 }
 0x364   :  { %v601_v20 = vpop.f32.mrf.mxu1 }
 0x365   :  { %605 = vst [vmem:[#allocation11] sm:$0x1] %v604_v19 }
 0x366   :  { %v726_v21 = vpop.f32.mrf.mxu1 }
 0x367   :  { %900 = shalt.err (!%p897_p1)
}
 0x368   :  { %615 = dma.vmem_to_hbm [thread:$0]  %s613_s19, 16, %s1041_s9, [#allocation4]  }
 0x369   :  { %915 = dma.done.wait [#allocation4], 16  }
 0x36a   :  { %916 = vsyncadd [#allocation4], 4294967280 }
 0x36b   :  { %619 = vsyncpa [#allocation3], 1 }
 0x36c   :  { %620 = vsyncpa [#allocation6], 1 }
 0x36d   :  { %621 = vsyncpa [#allocation9], 1 }
 0x36e   :  { %622 = vsyncpa [#allocation4], 1 }

</bundles_post_ra>
